<compile_context>
chip_gen: v5e
topology: v5e:2x2
jax: 0.10.0
libtpu: 0.0.40
codegen_flags: <defaults>
</compile_context>

<pallas_src>
import jax
import jax.numpy as jnp
from jax.experimental import pallas as pl
from jax.experimental.pallas import tpu as pltpu

_LANE = 128
_SUBLANE = 8


def _round_up(x: int, n: int) -> int:
    return ((x + n - 1) // n) * n


# ----------------------------- chip detection ------------------------------
def _tpu_info():
    """(vmem_bytes, multi_tc, mxu_256) with conservative fallbacks."""
    vmem = None
    try:
        vmem = int(pltpu.get_tpu_info().vmem_capacity_bytes)
    except Exception:
        vmem = None
    kind = ""
    try:
        kind = jax.devices()[0].device_kind.lower()
    except Exception:
        pass
    is_v7 = ("v7" in kind) or ("7x" in kind)
    is_v6 = "v6" in kind
    if vmem is None:
        vmem = (64 if is_v7 else 128) * 1024 * 1024
    if is_v7:
        vmem = min(vmem, 64 * 1024 * 1024)   # per-TC VMEM on v7x
    multi_tc = is_v7
    mxu_256 = is_v7 or is_v6
    return vmem, multi_tc, mxu_256


_BUFFERED_OK = None


def _buffered_supported() -> bool:
    """One-time capability probe for pipeline_mode=pl.Buffered(1)."""
    global _BUFFERED_OK
    if _BUFFERED_OK is None:
        try:
            pl.BlockSpec((_SUBLANE, _LANE), lambda i: (0, 0),
                         pipeline_mode=pl.Buffered(1))
            _BUFFERED_OK = True
        except Exception:
            _BUFFERED_OK = False
    return _BUFFERED_OK


# ------------------------------ fused kernel -------------------------------
def _make_mlp_kernel(num_layers: int, compute_dtype, precision):
    """Fused MLP: num_layers matmuls + biases, ReLU between (not after last)."""

    def kernel(*refs):
        x_ref = refs[0]
        o_ref = refs[-1]
        params = refs[1:-1]  # (w0, b0, w1, b1, ...)

        h = x_ref[...]
        if compute_dtype is not None:
            h = h.astype(compute_dtype)
        for i in range(num_layers):
            w = params[2 * i][...]
            b = params[2 * i + 1][...]          # (1, out_pad) f32
            if compute_dtype is not None:
                w = w.astype(compute_dtype)
            acc = jnp.dot(h, w, preferred_element_type=jnp.float32,
                          precision=precision) + b
            if i < num_layers - 1:
                # Minimal f32 epilogue (ReLU) then cast back for the next MXU pass.
                h = jnp.maximum(acc, 0.0)
                h = h.astype(compute_dtype if compute_dtype is not None
                             else x_ref.dtype)
            else:
                o_ref[...] = acc.astype(o_ref.dtype)

    return kernel


# ------------------- per-layer K/N-tiled fallback (huge W) ------------------
def _linear_kernel_factory(relu: bool, compute_dtype, precision):
    def kernel(x_ref, w_ref, b_ref, o_ref, acc_ref):
        @pl.when(pl.program_id(2) == 0)
        def _init():
            acc_ref[...] = jnp.zeros_like(acc_ref)

        xb = x_ref[...]
        wb = w_ref[...]
        if compute_dtype is not None:
            xb = xb.astype(compute_dtype)
            wb = wb.astype(compute_dtype)
        acc_ref[...] += jnp.dot(xb, wb, preferred_element_type=jnp.float32,
                                precision=precision)

        @pl.when(pl.program_id(2) == pl.num_programs(2) - 1)
        def _fin():
            r = acc_ref[...] + b_ref[...]
            if relu:
                r = jnp.maximum(r, 0.0)
            o_ref[...] = r.astype(o_ref.dtype)

    return kernel


def _linear_pallas(x2d, w, b, relu, *, mxu_256, vmem_total,
                   compute_dtype=None, precision=None):
    m, k = x2d.shape
    n = w.shape[1]
    lane_n = 256 if (mxu_256 and n > 128) else _LANE
    n_pad = _round_up(n, lane_n)
    k_pad = _round_up(k, _LANE)
    tk = 512 if k_pad % 512 == 0 else (256 if k_pad % 256 == 0 else 128)
    tn = 512 if n_pad % 512 == 0 else (256 if n_pad % 256 == 0 else 128)

    x_bytes = x2d.dtype.itemsize
    w_bytes = w.dtype.itemsize

    def tile_bytes(tm_):
        return (2 * tm_ * tk * x_bytes      # double-buffered x tile
                + 2 * tk * tn * w_bytes     # double-buffered w tile
                + 2 * tn * 4                # bias tile
                + 2 * tm_ * tn * x_bytes    # double-buffered out tile
                + tm_ * tn * 4)             # f32 accumulator scratch

    tm = 512 if x_bytes == 2 else 256
    while tm > _SUBLANE and tile_bytes(tm) > vmem_total // 2:
        tm //= 2

    xp = x2d if k_pad == k else jnp.pad(x2d, ((0, 0), (0, k_pad - k)))
    wp = jnp.zeros((k_pad, n_pad), w.dtype).at[:k, :n].set(w)
    bp = jnp.zeros((1, n_pad), jnp.float32).at[0, :n].set(b.astype(jnp.float32))

    grid = (pl.cdiv(m, tm), n_pad // tn, k_pad // tk)
    out = pl.pallas_call(
        _linear_kernel_factory(relu, compute_dtype, precision),
        out_shape=jax.ShapeDtypeStruct((m, n_pad), x2d.dtype),
        grid_spec=pltpu.PrefetchScalarGridSpec(
            num_scalar_prefetch=0,
            grid=grid,
            in_specs=[pl.BlockSpec((tm, tk), lambda i, j, kk: (i, kk)),
                      pl.BlockSpec((tk, tn), lambda i, j, kk: (kk, j)),
                      pl.BlockSpec((1, tn), lambda i, j, kk: (0, j))],
            out_specs=pl.BlockSpec((tm, tn), lambda i, j, kk: (i, j)),
            scratch_shapes=[pltpu.VMEM((tm, tn), jnp.float32)]),
        compiler_params=pltpu.CompilerParams(
            dimension_semantics=("parallel", "parallel", "arbitrary"),
            vmem_limit_bytes=int(min(vmem_total * 3 // 4,
                                     max(32 * 1024 * 1024,
                                         2 * tile_bytes(tm)))),
        ),
    )(xp, wp, bp)
    return out if n_pad == n else out[:, :n]


def _mlp_layerwise(x2d, weights, biases, *, mxu_256, vmem_total,
                   compute_dtype, precision):
    num_layers = len(weights)
    h = x2d
    for i, (w, b) in enumerate(zip(weights, biases)):
        h = _linear_pallas(h, w, b, relu=(i < num_layers - 1),
                           mxu_256=mxu_256, vmem_total=vmem_total,
                           compute_dtype=compute_dtype, precision=precision)
    return h


# --------------------------------- wrapper ----------------------------------
def mlp_forward(x, weights, biases, *, tile_m: int = 2048, compute_dtype=None):
    """Runs the fused MLP Pallas kernel.

    x:       (..., input_dim)
    weights: list of (in_dim, out_dim) arrays   (i.e. PyTorch W.T)
    biases:  list of (out_dim,) arrays
    compute_dtype: optional (e.g. jnp.bfloat16) fast-MXU compute path for f32
                   inputs; accumulation stays f32.
    """
    num_layers = len(weights)
    *lead, in_dim = x.shape
    out_dim = weights[-1].shape[1]

    m = 1
    for d in lead:
        m *= d
    x2d = x.reshape(m, in_dim)
    x_bytes = x.dtype.itemsize

    vmem_total, multi_tc, mxu_256 = _tpu_info()
    use_buffered = _buffered_supported()
    wbufs = 1 if use_buffered else 2

    # f32 inputs default to exact f32 MXU passes (faithful to nn.Linear);
    # bf16 inputs / compute_dtype take the fast default path.
    precision = (jax.lax.Precision.HIGHEST
                 if (compute_dtype is None and x.dtype == jnp.float32)
                 else None)

    # ---- Pad widths to lane multiples; layer-0 K padded too (lane-dense DMA).
    in_pad = _round_up(in_dim, _LANE)
    if in_pad != in_dim:
        x2d = jnp.pad(x2d, ((0, 0), (0, in_pad - in_dim)))

    padded_w, padded_b, dims = [], [], []
    prev_dim, prev_pad = in_dim, in_pad
    for li, (w, b) in enumerate(zip(weights, biases)):
        d_in, d_out = w.shape
        assert d_in == prev_dim, "layer dims must chain"
        lane_mult = 256 if (mxu_256 and d_out > 128) else _LANE
        d_out_pad = _round_up(d_out, lane_mult)
        w_p = jnp.zeros((prev_pad, d_out_pad), w.dtype).at[:d_in, :d_out].set(w)
        b_p = jnp.zeros((1, d_out_pad), jnp.float32).at[0, :d_out].set(
            b.astype(jnp.float32))
        padded_w.append(w_p)
        padded_b.append(b_p)
        dims.append((prev_pad, d_out_pad))
        prev_dim, prev_pad = d_out, d_out_pad
    out_pad = prev_pad

    max_pad = max(do for _, do in dims)
    w_bytes = sum(int(w.size) * w.dtype.itemsize for w in padded_w)
    b_bytes = sum(int(b.size) * b.dtype.itemsize for b in padded_b)
    budget = vmem_total // 2  # headroom for compiler scratch / spills

    def vmem_bytes(tm: int, weight_bufs: int) -> int:
        act = 2 * tm * in_pad * x_bytes       # double-buffered input tile
        act += 2 * tm * out_pad * x_bytes     # double-buffered output tile
        act += tm * max_pad * (4 + x_bytes)   # f32 acc + live native-dtype h
        return act + weight_bufs * (w_bytes + b_bytes)

    # ---- Big-weight fallback: fused residency doesn't fit -> per-layer tiled.
    if vmem_bytes(_SUBLANE, wbufs) > budget:
        y2d = _mlp_layerwise(x.reshape(m, in_dim), weights, biases,
                             mxu_256=mxu_256, vmem_total=vmem_total,
                             compute_dtype=compute_dtype, precision=precision)
        return y2d.reshape(*lead, out_dim)

    # ---- Row-tile selection (budget with the real buffer counts). -----------
    candidates = (2048, 1024, 512, 256, 128, 64, 32, 16, 8)
    if x_bytes == 2:  # bf16: keep sublane-packed rows happy (multiples of 16)
        candidates = tuple(c for c in candidates if c % 16 == 0)

    cap = max(_SUBLANE, _round_up(m, _SUBLANE))
    req = min(max(_SUBLANE, (tile_m // _SUBLANE) * _SUBLANE), cap)
    chosen = _SUBLANE
    for cand in candidates:
        if cand <= req and vmem_bytes(cand, wbufs) <= budget:
            chosen = cand
            break

    # Megacore balance only on multi-TC parts: prefer an even step count
    # without over-shrinking the tile.
    if multi_tc:
        steps = pl.cdiv(m, chosen)
        if steps > 1 and steps % 2 == 1:
            sub = 16 if x_bytes == 2 else _SUBLANE
            cand2 = _round_up(pl.cdiv(m, steps + 1), sub)
            if 0 < cand2 <= chosen and pl.cdiv(m, cand2) % 2 == 0:
                chosen = cand2
    tile_m = chosen

    vmem_limit = int(min(vmem_total * 3 // 4,
                         max(32 * 1024 * 1024,
                             2 * vmem_bytes(tile_m, wbufs))))

    # ---- Cost estimate (padded math matches what the MXU actually does). ----
    flops = 2 * m * sum(di * do for di, do in dims)
    bytes_accessed = m * (in_pad + out_pad) * x_bytes + w_bytes + b_bytes
    cost = pl.CostEstimate(flops=int(flops), transcendentals=0,
                           bytes_accessed=int(bytes_accessed))

    kernel = _make_mlp_kernel(num_layers, compute_dtype, precision)
    grid = (pl.cdiv(m, tile_m),)   # ragged last block masked by Pallas
    params_flat = []
    for w_p, b_p in zip(padded_w, padded_b):
        params_flat.extend([w_p, b_p])

    def _call(single_buffer_weights: bool):
        in_specs = [pl.BlockSpec((tile_m, in_pad), lambda i: (i, 0))]
        for w_p, b_p in zip(padded_w, padded_b):
            if single_buffer_weights:
                in_specs.append(pl.BlockSpec(w_p.shape, lambda i: (0, 0),
                                             pipeline_mode=pl.Buffered(1)))
                in_specs.append(pl.BlockSpec(b_p.shape, lambda i: (0, 0),
                                             pipeline_mode=pl.Buffered(1)))
            else:
                in_specs.append(pl.BlockSpec(w_p.shape, lambda i: (0, 0)))
                in_specs.append(pl.BlockSpec(b_p.shape, lambda i: (0, 0)))

        return pl.pallas_call(
            kernel,
            out_shape=jax.ShapeDtypeStruct((m, out_pad), x.dtype),
            grid_spec=pltpu.PrefetchScalarGridSpec(
                num_scalar_prefetch=0,
                grid=grid,
                in_specs=in_specs,
                out_specs=pl.BlockSpec((tile_m, out_pad), lambda i: (i, 0)),
            ),
            compiler_params=pltpu.CompilerParams(
                dimension_semantics=("parallel",),
                vmem_limit_bytes=vmem_limit,
            ),
            cost_estimate=cost,
        )(x2d, *params_flat)

    if use_buffered:
        try:
            out = _call(True)
        except (pltpu.LoweringException, NotImplementedError, TypeError,
                ValueError):
            # Only lowering-class rejections of Buffered(1) fall back; genuine
            # runtime errors (e.g. VMEM OOM) propagate.
            out = _call(False)
    else:
        out = _call(False)

    y2d = out if out_pad == out_dim else out[:, :out_dim]
    return y2d.reshape(*lead, out_dim)


# --------------------------- init & reference -------------------------------
def init_mlp_params(key, input_dim, hidden_dim, output_dim, num_layers):
    """nn.Linear-shaped params; weights returned as (in, out) = W.T."""
    h = [hidden_dim] * (num_layers - 1)
    dims = list(zip([input_dim] + h, h + [output_dim]))
    weights, biases = [], []
    for (n_in, n_out) in dims:
        key, kw, kb = jax.random.split(key, 3)
        bound = 1.0 / (n_in ** 0.5)
        w = jax.random.uniform(kw, (n_in, n_out), jnp.float32, -bound, bound)
        b = jax.random.uniform(kb, (n_out,), jnp.float32, -bound, bound)
        weights.append(w)
        biases.append(b)
    return weights, biases


def mlp_reference(x, weights, biases):
    """Pure-JAX reference matching the PyTorch forward (f32 math)."""
    num_layers = len(weights)
    h = x
    for i, (w, b) in enumerate(zip(weights, biases)):
        h = jnp.dot(h, w, precision=jax.lax.Precision.HIGHEST) + b
        if i < num_layers - 1:
            h = jnp.maximum(h, 0.0)
    return h


if __name__ == "__main__":
    # Small shapes consistent with the module's forward.
    input_dim, hidden_dim, output_dim, num_layers = 16, 32, 8, 3
    batch, seq = 2, 8

    key = jax.random.PRNGKey(0)
    key, kx = jax.random.split(key)
    x = jax.random.normal(kx, (batch, seq, input_dim), jnp.float32)

    weights, biases = init_mlp_params(
        key, input_dim, hidden_dim, output_dim, num_layers
    )

    y = mlp_forward(x, weights, biases)
    y = jax.block_until_ready(y)

    y_ref = mlp_reference(x, weights, biases)
    assert y.shape == (batch, seq, output_dim), y.shape
    assert jnp.allclose(y, y_ref, atol=1e-4, rtol=1e-4), (
        float(jnp.max(jnp.abs(y - y_ref)))
    )

    print("KERNEL_OK")
</pallas_src>

<mosaic_0001>
module attributes {stable_mosaic.version = 11 : i64} {
  func.func @kernel(%arg0: i32, %arg1: memref<16x128xf32, #tpu.memory_space<vmem>>, %arg2: memref<128x128xf32, #tpu.memory_space<vmem>>, %arg3: memref<1x128xf32, #tpu.memory_space<vmem>>, %arg4: memref<128x128xf32, #tpu.memory_space<vmem>>, %arg5: memref<1x128xf32, #tpu.memory_space<vmem>>, %arg6: memref<128x128xf32, #tpu.memory_space<vmem>>, %arg7: memref<1x128xf32, #tpu.memory_space<vmem>>, %arg8: memref<16x128xf32, #tpu.memory_space<vmem>>) attributes {dimension_semantics = [#tpu.dimension_semantics<parallel>], iteration_bounds = array<i64: 1>, scalar_prefetch = 0 : i64, scratch_operands = 0 : i64, tpu.core_type = #tpu.core_type<tc>, window_params = [{transform_indices = @transform_0, window_bounds = array<i64: 16, 128>}, {pipeline_mode = #tpu.pipeline_mode<synchronous>, transform_indices = @transform_1, window_bounds = array<i64: 128, 128>}, {pipeline_mode = #tpu.pipeline_mode<synchronous>, transform_indices = @transform_2, window_bounds = array<i64: 1, 128>}, {pipeline_mode = #tpu.pipeline_mode<synchronous>, transform_indices = @transform_3, window_bounds = array<i64: 128, 128>}, {pipeline_mode = #tpu.pipeline_mode<synchronous>, transform_indices = @transform_4, window_bounds = array<i64: 1, 128>}, {pipeline_mode = #tpu.pipeline_mode<synchronous>, transform_indices = @transform_5, window_bounds = array<i64: 128, 128>}, {pipeline_mode = #tpu.pipeline_mode<synchronous>, transform_indices = @transform_6, window_bounds = array<i64: 1, 128>}, {transform_indices = @transform_7, window_bounds = array<i64: 16, 128>}]} {
    %c0 = arith.constant 0 : index
    %c0_0 = arith.constant 0 : index
    %0 = vector.load %arg1[%c0, %c0_0] : memref<16x128xf32, #tpu.memory_space<vmem>>, vector<16x128xf32>
    %c0_1 = arith.constant 0 : index
    %c0_2 = arith.constant 0 : index
    %1 = vector.load %arg2[%c0_1, %c0_2] : memref<128x128xf32, #tpu.memory_space<vmem>>, vector<128x128xf32>
    %c0_3 = arith.constant 0 : index
    %c0_4 = arith.constant 0 : index
    %2 = vector.load %arg3[%c0_3, %c0_4] : memref<1x128xf32, #tpu.memory_space<vmem>>, vector<1x128xf32>
    %cst = arith.constant dense<0.000000e+00> : vector<16x128xf32>
    %3 = tpu.matmul %0, %1, %cst {dimension_numbers = #tpu.dot_dimension_numbers<[1], [0], [0], [1], [0, 0, 1, 1], [], []>, precision = #tpu.contract_precision<fp32>} : vector<16x128xf32>, vector<128x128xf32>, vector<16x128xf32> -> vector<16x128xf32>
    %4 = vector.broadcast %2 : vector<1x128xf32> to vector<16x128xf32>
    %5 = arith.addf %3, %4 : vector<16x128xf32>
    %cst_5 = arith.constant 0.000000e+00 : f32
    %6 = vector.broadcast %cst_5 : f32 to vector<16x128xf32>
    %7 = arith.maximumf %5, %6 : vector<16x128xf32>
    %c0_6 = arith.constant 0 : index
    %c0_7 = arith.constant 0 : index
    %8 = vector.load %arg4[%c0_6, %c0_7] : memref<128x128xf32, #tpu.memory_space<vmem>>, vector<128x128xf32>
    %c0_8 = arith.constant 0 : index
    %c0_9 = arith.constant 0 : index
    %9 = vector.load %arg5[%c0_8, %c0_9] : memref<1x128xf32, #tpu.memory_space<vmem>>, vector<1x128xf32>
    %cst_10 = arith.constant dense<0.000000e+00> : vector<16x128xf32>
    %10 = tpu.matmul %7, %8, %cst_10 {dimension_numbers = #tpu.dot_dimension_numbers<[1], [0], [0], [1], [0, 0, 1, 1], [], []>, precision = #tpu.contract_precision<fp32>} : vector<16x128xf32>, vector<128x128xf32>, vector<16x128xf32> -> vector<16x128xf32>
    %11 = vector.broadcast %9 : vector<1x128xf32> to vector<16x128xf32>
    %12 = arith.addf %10, %11 : vector<16x128xf32>
    %cst_11 = arith.constant 0.000000e+00 : f32
    %13 = vector.broadcast %cst_11 : f32 to vector<16x128xf32>
    %14 = arith.maximumf %12, %13 : vector<16x128xf32>
    %c0_12 = arith.constant 0 : index
    %c0_13 = arith.constant 0 : index
    %15 = vector.load %arg6[%c0_12, %c0_13] : memref<128x128xf32, #tpu.memory_space<vmem>>, vector<128x128xf32>
    %c0_14 = arith.constant 0 : index
    %c0_15 = arith.constant 0 : index
    %16 = vector.load %arg7[%c0_14, %c0_15] : memref<1x128xf32, #tpu.memory_space<vmem>>, vector<1x128xf32>
    %cst_16 = arith.constant dense<0.000000e+00> : vector<16x128xf32>
    %17 = tpu.matmul %14, %15, %cst_16 {dimension_numbers = #tpu.dot_dimension_numbers<[1], [0], [0], [1], [0, 0, 1, 1], [], []>, precision = #tpu.contract_precision<fp32>} : vector<16x128xf32>, vector<128x128xf32>, vector<16x128xf32> -> vector<16x128xf32>
    %18 = vector.broadcast %16 : vector<1x128xf32> to vector<16x128xf32>
    %19 = arith.addf %17, %18 : vector<16x128xf32>
    %c0_17 = arith.constant 0 : index
    %c0_18 = arith.constant 0 : index
    %20 = vector.load %arg8[%c0_17, %c0_18] : memref<16x128xf32, #tpu.memory_space<vmem>>, vector<16x128xf32>
    tpu.vector_store %arg8[%c0_17, %c0_18], %19 {strides = array<i32>} : memref<16x128xf32, #tpu.memory_space<vmem>>, vector<16x128xf32>,
    return
  }
  func.func @transform_0(%arg0: i32) -> (i32, i32) {
    %c0_i32 = arith.constant 0 : i32
    %c0_i32_0 = arith.constant 0 : i32
    return %arg0, %c0_i32 : i32, i32
  }
  func.func @transform_1(%arg0: i32) -> (i32, i32) {
    %c0_i32 = arith.constant 0 : i32
    %c0_i32_0 = arith.constant 0 : i32
    %c0_i32_1 = arith.constant 0 : i32
    return %c0_i32, %c0_i32_0 : i32, i32
  }
  func.func @transform_2(%arg0: i32) -> (i32, i32) {
    %c0_i32 = arith.constant 0 : i32
    %c0_i32_0 = arith.constant 0 : i32
    %c0_i32_1 = arith.constant 0 : i32
    return %c0_i32, %c0_i32_0 : i32, i32
  }
  func.func @transform_3(%arg0: i32) -> (i32, i32) {
    %c0_i32 = arith.constant 0 : i32
    %c0_i32_0 = arith.constant 0 : i32
    %c0_i32_1 = arith.constant 0 : i32
    return %c0_i32, %c0_i32_0 : i32, i32
  }
  func.func @transform_4(%arg0: i32) -> (i32, i32) {
    %c0_i32 = arith.constant 0 : i32
    %c0_i32_0 = arith.constant 0 : i32
    %c0_i32_1 = arith.constant 0 : i32
    return %c0_i32, %c0_i32_0 : i32, i32
  }
  func.func @transform_5(%arg0: i32) -> (i32, i32) {
    %c0_i32 = arith.constant 0 : i32
    %c0_i32_0 = arith.constant 0 : i32
    %c0_i32_1 = arith.constant 0 : i32
    return %c0_i32, %c0_i32_0 : i32, i32
  }
  func.func @transform_6(%arg0: i32) -> (i32, i32) {
    %c0_i32 = arith.constant 0 : i32
    %c0_i32_0 = arith.constant 0 : i32
    %c0_i32_1 = arith.constant 0 : i32
    return %c0_i32, %c0_i32_0 : i32, i32
  }
  func.func @transform_7(%arg0: i32) -> (i32, i32) {
    %c0_i32 = arith.constant 0 : i32
    %c0_i32_0 = arith.constant 0 : i32
    return %arg0, %c0_i32 : i32, i32
  }
}

</mosaic_0001>

<bundles_post_ra>
// kernel: tpu_custom_call.1
= control target key start
LH: loop header
LB: loop body
LE: loop exit
PB: predicated region body
PF: predicated region fallthrough
CT: control target
= control target key end

     0   :  { %12 = vsyncpa [#allocation3], 0  ;;  %s2215_s0 = inlined_call_operand.hbm [shape: f32[16,128], index: 0, kind: input, shape index: {}]   ;;  %s2216_s1 = inlined_call_operand.hbm [shape: f32[128,128], index: 1, kind: input, shape index: {}]   ;;  %s2217_s2 = inlined_call_operand.vmem [shape: f32[1,128], index: 2, kind: input, shape index: {}]   ;;  %s2218_s3 = inlined_call_operand.hbm [shape: f32[128,128], index: 3, kind: input, shape index: {}]   ;;  %s2219_s4 = inlined_call_operand.vmem [shape: f32[1,128], index: 4, kind: input, shape index: {}]   ;;  %s2220_s5 = inlined_call_operand.hbm [shape: f32[128,128], index: 5, kind: input, shape index: {}]   ;;  %s2221_s6 = inlined_call_operand.vmem [shape: f32[1,128], index: 6, kind: input, shape index: {}]   ;;  %s2222_s7 = inlined_call_operand.hbm [shape: f32[16,128], index: 7, kind: output, shape index: {}]  }
   0x1   :  { %13 = vsyncpa [#allocation6], 0 }
   0x2   :  { %14 = vsyncpa [#allocation9], 0 }
   0x3   :  { %15 = vsyncpa [#allocation4], 0  ;;  %s33_s26 = sshll.u32 %s2216_s1, 4  ;;  %s1465_s27 = smov [#allocation5]   ;;  %s34_s26 = int_to_ptr.hbm [resolvable:$true] %s33_s26 }
   0x4   :  { %s35_s28 = sshll.u32 %s1465_s27, 4  ;;  %s20_s8 = sshll.u32 %s2215_s0, 4  ;;  %s36_s28 = int_to_ptr.vmem [resolvable:$true] %s35_s28  ;;  %s21_s8 = int_to_ptr.hbm [resolvable:$true] %s20_s8 }
   0x5   :  { %s1466_s9 = smov 128   ;;  %s1467_s10 = smov 8  }
   0x6   :  { %41 = dma.hbm_to_vmem [thread:$0]  %s34_s26, 2048, %s36_s28, [#allocation6], %s1466_s9, %s1466_s9, %s1467_s10  }
   0x7   :  { %s1468_s11 = smov [#allocation2]   ;;  %s48_s1 = sshll.u32 %s2218_s3, 4  ;;  %s49_s1 = int_to_ptr.hbm [resolvable:$true] %s48_s1 }
   0x8   :  { %s22_s12 = sshll.u32 %s1468_s11, 4  ;;  %s63_s16 = sshll.u32 %s2220_s5, 4  ;;  %s23_s12 = int_to_ptr.vmem [resolvable:$true] %s22_s12  ;;  %s64_s16 = int_to_ptr.hbm [resolvable:$true] %s63_s16 }
   0x9   :  { %28 = dma.hbm_to_vmem [thread:$0]  %s21_s8, 256, %s23_s12, [#allocation3], %s1466_s9, %s1466_s9, %s1467_s10  }
   0xa   :  { %s1469_s17 = smov [#allocation7]   ;;  %s1470_s19 = smov [#allocation8]  }
   0xb   :  { %s50_s18 = sshll.u32 %s1469_s17, 4  ;;  %s65_s3 = sshll.u32 %s1470_s19, 4  ;;  %s51_s18 = int_to_ptr.vmem [resolvable:$true] %s50_s18  ;;  %s66_s3 = int_to_ptr.vmem [resolvable:$true] %s65_s3 }
   0xc   :  { %56 = dma.hbm_to_vmem [thread:$0]  %s49_s1, 2048, %s51_s18, [#allocation6], %s1466_s9, %s1466_s9, %s1467_s10  }
   0xd   :  { %71 = dma.hbm_to_vmem [thread:$0]  %s64_s16, 2048, %s66_s3, [#allocation9], %s1466_s9, %s1466_s9, %s1467_s10  }
   0xe   :  { %1457 = dma.done.wait [#allocation3], 256  }
   0xf   :  { %1458 = vsyncadd [#allocation3], 4294967040 }
  0x10   :  { %1459 = dma.done.wait [#allocation6], 4096  }
  0x11   :  { %1460 = vsyncadd [#allocation6], 4294963200 }
  0x12   :  { %1461 = dma.done.wait [#allocation9], 2048  }
  0x13   :  { %1462 = vsyncadd [#allocation9], 4294965248  ;;  %v107_v0 = vld [vmem:[#allocation5 + $0x78] sm:$0xff]  ;;  %v106_v1 = vld [vmem:[#allocation5 + $0x70] sm:$0xff]  ;;  %s1471_s23 = smov [#allocation10]   ;;  %s1280_s26 = sshll.u32 %s2222_s7, 4  ;;  %s1281_s26 = int_to_ptr.hbm [resolvable:$true] %s1280_s26 }
  0x14   :  { %v105_v2 = vld [vmem:[#allocation5 + $0x68] sm:$0xff]  ;;  %v1536_v3 = vand.u32 4294901760, %v107_v0  ;;  %v1538_v4 = vand.u32 4294901760, %v106_v1  ;;  %v104_v6 = vld [vmem:[#allocation5 + $0x60] sm:$0xff]  ;;  %v103_v7 = vld [vmem:[#allocation5 + $0x58] sm:$0xff] }
  0x15   :  { %v1540_v5 = vand.u32 4294901760, %v105_v2  ;;  %v102_v8 = vld [vmem:[#allocation5 + $0x50] sm:$0xff]  ;;  %v1542_v9 = vand.u32 4294901760, %v104_v6  ;;  %v1544_v10 = vand.u32 4294901760, %v103_v7  ;;  %v101_v12 = vld [vmem:[#allocation5 + $0x48] sm:$0xff]  ;;  %v100_v13 = vld [vmem:[#allocation5 + $0x40] sm:$0xff] }
  0x16   :  { %v1546_v11 = vand.u32 4294901760, %v102_v8  ;;  %113 = vmatpush.msra.mxu0 %v1536_v3  ;;  %v1550_v14 = vsub.f32 %v107_v0, %v1536_v3  ;;  %v1553_v15 = vsub.f32 %v106_v1, %v1538_v4  ;;  %v1555_v16 = vand.u32 4294901760, %v101_v12  ;;  %v99_v18 = vld [vmem:[#allocation5 + $0x38] sm:$0xff]  ;;  %326 = vmatpush.msra.mxu3 %v1536_v3  ;;  %v98_v25 = vld [vmem:[#allocation5 + $0x30] sm:$0xff]  ;;  %v97_v33 = vld [vmem:[#allocation5 + $0x28] sm:$0xff] }
  0x17   :  { %v1558_v17 = vsub.f32 %v105_v2, %v1540_v5  ;;  %v1562_v19 = vsub.f32 %v104_v6, %v1542_v9  ;;  %v1565_v20 = vsub.f32 %v103_v7, %v1544_v10  ;;  %v1571_v24 = vand.u32 4294901760, %v100_v13  ;;  %v96_v40 = vld [vmem:[#allocation5 + $0x20] sm:$0xff]  ;;  %v95_v46 = vld [vmem:[#allocation5 + $0x18] sm:$0xff]  ;;  %v94_v52 = vld [vmem:[#allocation5 + $0x10] sm:$0xff] }
  0x18   :  { %115 = vmatpush.msra.mxu0 %v1538_v4  ;;  %v163_v21 = vand.u32 4294901760, %v1550_v14  ;;  %v169_v22 = vand.u32 4294901760, %v1553_v15  ;;  %268 = vmatpush.msra.mxu2 %v1550_v14  ;;  %v1575_v27 = vand.u32 4294901760, %v99_v18  ;;  %v1579_v29 = vsub.f32 %v102_v8, %v1546_v11  ;;  %v93_v58 = vld [vmem:[#allocation5 + $0x8] sm:$0xff]  ;;  %v90_v61 = vld [vmem:[#allocation2] sm:$0xff]  ;;  %v92_v1 = vld [vmem:[#allocation5] sm:$0xff] }
  0x19   :  { %v175_v23 = vand.u32 4294901760, %v1558_v17  ;;  %v181_v26 = vand.u32 4294901760, %v1562_v19  ;;  %v187_v28 = vand.u32 4294901760, %v1565_v20  ;;  %328 = vmatpush.msra.mxu3 %v1538_v4  ;;  %v1593_v34 = vsub.f32 %v101_v12, %v1555_v16 }
  0x1a   :  { %117 = vmatpush.msra.mxu0 %v1540_v5  ;;  %v164_v30 = vsub.f32 %v1550_v14, %v163_v21  ;;  %v170_v31 = vsub.f32 %v1553_v15, %v169_v22  ;;  %v1595_v35 = vand.u32 4294901760, %v98_v25  ;;  %271 = vmatpush.msra.mxu2 %v1553_v15  ;;  %v193_v39 = vand.u32 4294901760, %v1579_v29  ;;  %v500_v15 = vld [vmem:[#allocation7 + $0x70] sm:$0xff] }
  0x1b   :  { %v176_v32 = vsub.f32 %v1558_v17, %v175_v23  ;;  %330 = vmatpush.msra.mxu3 %v1540_v5  ;;  %v182_v38 = vsub.f32 %v1562_v19, %v181_v26  ;;  %v1604_v41 = vand.u32 4294901760, %v97_v33  ;;  %v1607_v42 = vsub.f32 %v100_v13, %v1571_v24 }
  0x1c   :  { %119 = vmatpush.msra.mxu0 %v1542_v9  ;;  %v165_v36 = vand.u32 4294901760, %v164_v30  ;;  %v171_v37 = vand.u32 4294901760, %v170_v31  ;;  %274 = vmatpush.msra.mxu2 %v1558_v17  ;;  %v188_v44 = vsub.f32 %v1565_v20, %v187_v28  ;;  %v199_v45 = vand.u32 4294901760, %v1593_v34  ;;  %v91_v31 = vld [vmem:[#allocation2 + $0x8] sm:$0xff]  ;;  %v499_v17 = vld [vmem:[#allocation7 + $0x68] sm:$0xff] }
  0x1d   :  { %332 = vmatpush.msra.mxu3 %v1542_v9  ;;  %v177_v43 = vand.u32 4294901760, %v176_v32  ;;  %v1617_v47 = vsub.f32 %v99_v18, %v1575_v27  ;;  %v1619_v48 = vand.u32 4294901760, %v96_v40  ;;  %v183_v49 = vand.u32 4294901760, %v182_v38 }
  0x1e   :  { %121 = vmatpush.msra.mxu0 %v1544_v10  ;;  %166 = vmatpush.msra.mxu1 %v165_v36  ;;  %v194_v50 = vsub.f32 %v1579_v29, %v193_v39  ;;  %v205_v51 = vand.u32 4294901760, %v1607_v42  ;;  %v1629_v53 = vsub.f32 %v98_v25, %v1595_v35  ;;  %v1631_v54 = vand.u32 4294901760, %v95_v46 }
  0x1f   :  { %277 = vmatpush.msra.mxu2 %v1562_v19  ;;  %334 = vmatpush.msra.mxu3 %v1544_v10  ;;  %v189_v55 = vand.u32 4294901760, %v188_v44  ;;  %v200_v56 = vsub.f32 %v1593_v34, %v199_v45  ;;  %v211_v57 = vand.u32 4294901760, %v1617_v47  ;;  %v1641_v59 = vsub.f32 %v97_v33, %v1604_v41 }
  0x20   :  { %123 = vmatpush.msra.mxu0 %v1546_v11  ;;  %172 = vmatpush.msra.mxu1 %v171_v37  ;;  %v1643_v60 = vand.u32 4294901760, %v94_v52  ;;  %v195_v62 = vand.u32 4294901760, %v194_v50  ;;  %v206_v63 = vsub.f32 %v1607_v42, %v205_v51  ;;  %v217_v0 = vand.u32 4294901760, %v1629_v53 }
  0x21   :  { %280 = vmatpush.msra.mxu2 %v1565_v20  ;;  %336 = vmatpush.msra.mxu3 %v1546_v11  ;;  %v1653_v2 = vsub.f32 %v96_v40, %v1619_v48  ;;  %v1655_v6 = vand.u32 4294901760, %v93_v58  ;;  %v1659_v7 = vsub.f32 %v95_v46, %v1631_v54  ;;  %v201_v8 = vand.u32 4294901760, %v200_v56 }
  0x22   :  { %125 = vmatpush.msra.mxu0 %v1555_v16  ;;  %178 = vmatpush.msra.mxu1 %v177_v43  ;;  %v212_v12 = vsub.f32 %v1617_v47, %v211_v57  ;;  %v223_v13 = vand.u32 4294901760, %v1641_v59  ;;  %v1667_v18 = vand.u32 4294901760, %v90_v61  ;;  %v1669_v25 = vand.u32 4294901760, %v92_v1 }
  0x23   :  { %283 = vmatpush.msra.mxu2 %v1579_v29  ;;  %338 = vmatpush.msra.mxu3 %v1555_v16  ;;  %v1673_v30 = vsub.f32 %v94_v52, %v1643_v60  ;;  %v207_v32 = vand.u32 4294901760, %v206_v63  ;;  %v218_v33 = vsub.f32 %v1629_v53, %v217_v0  ;;  %v229_v36 = vand.u32 4294901760, %v1653_v2 }
  0x24   :  { %127 = vmatpush.msra.mxu0 %v1571_v24  ;;  %184 = vmatpush.msra.mxu1 %v183_v49  ;;  %v1682_v37 = vsub.f32 %v90_v61, %v1667_v18  ;;  %v235_v38 = vand.u32 4294901760, %v1659_v7  ;;  %v1687_v40 = vsub.f32 %v93_v58, %v1655_v6  ;;  %v213_v43 = vand.u32 4294901760, %v212_v12 }
  0x25   :  { %286 = vmatpush.msra.mxu2 %v1593_v34  ;;  %340 = vmatpush.msra.mxu3 %v1571_v24  ;;  %v224_v44 = vsub.f32 %v1641_v59, %v223_v13  ;;  %v1695_v49 = vand.u32 4294901760, %v91_v31  ;;  %v219_v50 = vand.u32 4294901760, %v218_v33  ;;  %v230_v52 = vsub.f32 %v1653_v2, %v229_v36 }
  0x26   :  { %129 = vmatpush.msra.mxu0 %v1575_v27  ;;  %190 = vmatpush.msra.mxu1 %v189_v55  ;;  %v146_v46 = vand.u32 4294901760, %v1682_v37  ;;  %v241_v55 = vand.u32 4294901760, %v1673_v30  ;;  %v1705_v56 = vsub.f32 %v92_v1, %v1669_v25  ;;  %v247_v58 = vand.u32 4294901760, %v1687_v40 }
  0x27   :  { %289 = vmatpush.msra.mxu2 %v1607_v42  ;;  %342 = vmatpush.msra.mxu3 %v1575_v27  ;;  %v225_v61 = vand.u32 4294901760, %v224_v44  ;;  %v231_v1 = vand.u32 4294901760, %v230_v52  ;;  %v1765_v19 = vand.u32 4294901760, %v500_v15  ;;  %v1767_v20 = vand.u32 4294901760, %v499_v17 }
  0x28   :  { %131 = vmatpush.msra.mxu0 %v1595_v35  ;;  %196 = vmatpush.msra.mxu1 %v195_v62  ;;  %v236_v62 = vsub.f32 %v1659_v7, %v235_v38  ;;  %v147_v63 = vsub.f32 %v1682_v37, %v146_v46  ;;  %v242_v12 = vsub.f32 %v1673_v30, %v241_v55 }
  0x29   :  { %292 = vmatpush.msra.mxu2 %v1617_v47  ;;  %344 = vmatpush.msra.mxu3 %v1595_v35  ;;  %v248_v33 = vsub.f32 %v1687_v40, %v247_v58  ;;  %v1783_v29 = vsub.f32 %v500_v15, %v1765_v19  ;;  %v1786_v34 = vsub.f32 %v499_v17, %v1767_v20 }
  0x2a   :  { %133 = vmatpush.msra.mxu0 %v1604_v41  ;;  %202 = vmatpush.msra.mxu1 %v201_v8  ;;  %v153_v8 = vsub.f32 %v91_v31, %v1695_v49  ;;  %v237_v31 = vand.u32 4294901760, %v236_v62 }
  0x2b   :  { %295 = vmatpush.msra.mxu2 %v1629_v53  ;;  %346 = vmatpush.msra.mxu3 %v1604_v41  ;;  %v563_v47 = vand.u32 4294901760, %v1783_v29 }
  0x2c   :  { %135 = vmatpush.msra.mxu0 %v1619_v48  ;;  %208 = vmatpush.msra.mxu1 %v207_v32  ;;  %v253_v32 = vand.u32 4294901760, %v1705_v56  ;;  %v154_v44 = vand.u32 4294901760, %v153_v8 }
  0x2d   :  { %298 = vmatpush.msra.mxu2 %v1641_v59  ;;  %348 = vmatpush.msra.mxu3 %v1619_v48  ;;  %v564_v59 = vsub.f32 %v1783_v29, %v563_v47 }
  0x2e   :  { %137 = vmatpush.msra.mxu0 %v1631_v54  ;;  %214 = vmatpush.msra.mxu1 %v213_v43  ;;  %v148_v43 = vand.u32 4294901760, %v147_v63  ;;  %v254_v52 = vsub.f32 %v1705_v56, %v253_v32  ;;  %v155_v62 = vsub.f32 %v153_v8, %v154_v44 }
  0x2f   :  { %301 = vmatpush.msra.mxu2 %v1653_v2  ;;  %350 = vmatpush.msra.mxu3 %v1631_v54 }
  0x30   :  { %139 = vmatpush.msra.mxu0 %v1643_v60  ;;  %220 = vmatpush.msra.mxu1 %v219_v50  ;;  %v243_v50 = vand.u32 4294901760, %v242_v12  ;;  %v255_v63 = vand.u32 4294901760, %v254_v52  ;;  %v156_v14 = vand.u32 4294901760, %v155_v62 }
  0x31   :  { %304 = vmatpush.msra.mxu2 %v1659_v7  ;;  %352 = vmatpush.msra.mxu3 %v1643_v60 }
  0x32   :  { %141 = vmatpush.msra.mxu0 %v1655_v6  ;;  %226 = vmatpush.msra.mxu1 %v225_v61  ;;  %v249_v61 = vand.u32 4294901760, %v248_v33 }
  0x33   :  { %307 = vmatpush.msra.mxu2 %v1673_v30  ;;  %354 = vmatpush.msra.mxu3 %v1655_v6 }
  0x34   :  { %143 = vmatpush.msra.mxu0 %v1669_v25  ;;  %232 = vmatpush.msra.mxu1 %v231_v1 }
  0x35   :  { %310 = vmatpush.msra.mxu2 %v1687_v40  ;;  %149 = vmatmul.f32.vlgmr.msra.gmra.mxu0 %v148_v43 }
  0x36   :  { %373 = vmatpush.msrb.mxu0 %v163_v21  ;;  %238 = vmatpush.msra.mxu1 %v237_v31  ;;  %v497_v21 = vld [vmem:[#allocation7 + $0x58] sm:$0xff] }
  0x37   :  { %313 = vmatpush.msra.mxu2 %v1705_v56  ;;  %356 = vmatpush.msra.mxu3 %v1669_v25 }
  0x38   :  { %377 = vmatpush.msrb.mxu0 %v169_v22  ;;  %244 = vmatpush.msra.mxu1 %v243_v50  ;;  %v496_v22 = vld [vmem:[#allocation7 + $0x50] sm:$0xff] }
  0x39   :  { %316 = vmatmul.f32.vlgmr.msra.gmra.mxu2 %v1682_v37  ;;  %360 = vmatmul.f32.vlgmr.msra.gmra.mxu3 %v146_v46 }
  0x3a   :  { %381 = vmatpush.msrb.mxu0 %v175_v23  ;;  %250 = vmatpush.msra.mxu1 %v249_v61  ;;  %v1772_v23 = vand.u32 4294901760, %v497_v21 }
  0x3c   :  { %385 = vmatpush.msrb.mxu0 %v181_v26  ;;  %256 = vmatpush.msra.mxu1 %v255_v63  ;;  %v1774_v26 = vand.u32 4294901760, %v496_v22  ;;  %v1793_v42 = vsub.f32 %v497_v21, %v1772_v23  ;;  %v489_v21 = vld [vmem:[#allocation7 + $0x18] sm:$0xff] }
  0x3d   :  { %157 = vmatmul.f32.gmra.mxu0 %v156_v14  ;;  %258 = vmatmul.f32.vlgmr.msra.gmra.mxu1 %v1667_v18 }
  0x3e   :  { %389 = vmatpush.msrb.mxu0 %v187_v28  ;;  %444 = vmatpush.msrb.mxu1 %v1536_v3  ;;  %v501_v3 = vld [vmem:[#allocation7 + $0x78] sm:$0xff]  ;;  %v495_v28 = vld [vmem:[#allocation7 + $0x48] sm:$0xff]  ;;  %v581_v46 = vand.u32 4294901760, %v1793_v42 }
  0x3f   :  { %v1801_v53 = vand.u32 4294901760, %v495_v28 }
  0x40   :  { %393 = vmatpush.msrb.mxu0 %v193_v39  ;;  %446 = vmatpush.msrb.mxu1 %v1538_v4  ;;  %v1763_v4 = vand.u32 4294901760, %v501_v3 }
  0x41   :  { %321 = vmatmul.f32.gmra.mxu2 %v153_v8  ;;  %366 = vmatmul.f32.gmra.mxu3 %v154_v44  ;;  %v1828_v2 = vsub.f32 %v495_v28, %v1801_v53 }
  0x42   :  { %397 = vmatpush.msrb.mxu0 %v199_v45  ;;  %448 = vmatpush.msrb.mxu1 %v1540_v5  ;;  %v498_v5 = vld [vmem:[#allocation7 + $0x60] sm:$0xff] }
  0x43   :  { %507 = vmatpush.msrb.mxu2 %v1763_v4  ;;  %v494_v45 = vld [vmem:[#allocation7 + $0x40] sm:$0xff]  ;;  %v593_v30 = vand.u32 4294901760, %v1828_v2 }
  0x44   :  { %401 = vmatpush.msrb.mxu0 %v205_v51  ;;  %450 = vmatpush.msrb.mxu1 %v1542_v9  ;;  %v1770_v9 = vand.u32 4294901760, %v498_v5  ;;  %v569_v51 = vand.u32 4294901760, %v1786_v34 }
  0x45   :  { %262 = vmatmul.f32.gmra.mxu1 %v1695_v49  ;;  %509 = vmatpush.msrb.mxu2 %v1765_v19 }
  0x46   :  { %405 = vmatpush.msrb.mxu0 %v211_v57  ;;  %452 = vmatpush.msrb.mxu1 %v1544_v10  ;;  %v1780_v10 = vsub.f32 %v501_v3, %v1763_v4  ;;  %v1789_v39 = vsub.f32 %v498_v5, %v1770_v9  ;;  %v570_v37 = vsub.f32 %v1786_v34, %v569_v51 }
  0x47   :  { %511 = vmatpush.msrb.mxu2 %v1767_v20 }
  0x48   :  { %409 = vmatpush.msrb.mxu0 %v217_v0  ;;  %454 = vmatpush.msrb.mxu1 %v1546_v11  ;;  %v557_v11 = vand.u32 4294901760, %v1780_v10  ;;  %v575_v57 = vand.u32 4294901760, %v1789_v39  ;;  %v1806_v0 = vsub.f32 %v496_v22, %v1774_v26  ;;  %v571_v7 = vand.u32 4294901760, %v570_v37 }
  0x49   :  { %513 = vmatpush.msrb.mxu2 %v1770_v9 }
  0x4a   :  { %413 = vmatpush.msrb.mxu0 %v223_v13  ;;  %456 = vmatpush.msrb.mxu1 %v1555_v16  ;;  %v558_v16 = vsub.f32 %v1780_v10, %v557_v11  ;;  %v1817_v13 = vand.u32 4294901760, %v494_v45  ;;  %v576_v8 = vsub.f32 %v1789_v39, %v575_v57  ;;  %v587_v1 = vand.u32 4294901760, %v1806_v0 }
  0x4b   :  { %515 = vmatpush.msrb.mxu2 %v1772_v23 }
  0x4c   :  { %417 = vmatpush.msrb.mxu0 %v229_v36  ;;  %458 = vmatpush.msrb.mxu1 %v1571_v24  ;;  %v559_v24 = vand.u32 4294901760, %v558_v16  ;;  %v565_v36 = vand.u32 4294901760, %v564_v59  ;;  %v488_v16 = vld [vmem:[#allocation7 + $0x10] sm:$0xff] }
  0x4d   :  { %517 = vmatpush.msrb.mxu2 %v1774_v26 }
  0x4e   :  { %421 = vmatpush.msrb.mxu0 %v235_v38  ;;  %460 = vmatpush.msrb.mxu1 %v1575_v27  ;;  %v1839_v27 = vsub.f32 %v494_v45, %v1817_v13  ;;  %v582_v38 = vsub.f32 %v1793_v42, %v581_v46  ;;  %v1933_v45 = vand.u32 4294901760, %v489_v21 }
  0x4f   :  { %560 = vmatpush.msrb.mxu3 %v559_v24  ;;  %519 = vmatpush.msrb.mxu2 %v1801_v53  ;;  %v1941_v24 = vand.u32 4294901760, %v488_v16 }
  0x50   :  { %425 = vmatpush.msrb.mxu0 %v241_v55  ;;  %462 = vmatpush.msrb.mxu1 %v1595_v35  ;;  %v577_v35 = vand.u32 4294901760, %v576_v8  ;;  %v588_v55 = vsub.f32 %v1806_v0, %v587_v1  ;;  %v599_v40 = vand.u32 4294901760, %v1839_v27  ;;  %v1939_v37 = vsub.f32 %v489_v21, %v1933_v45  ;;  %v487_v8 = vld [vmem:[#allocation7 + $0x8] sm:$0xff] }
  0x51   :  { %566 = vmatpush.msrb.mxu3 %v565_v36  ;;  %521 = vmatpush.msrb.mxu2 %v1817_v13 }
  0x52   :  { %429 = vmatpush.msrb.mxu0 %v247_v58  ;;  %464 = vmatpush.msrb.mxu1 %v1604_v41  ;;  %v583_v41 = vand.u32 4294901760, %v582_v38  ;;  %v594_v58 = vsub.f32 %v1828_v2, %v593_v30  ;;  %v589_v12 = vand.u32 4294901760, %v588_v55  ;;  %v629_v38 = vand.u32 4294901760, %v1939_v37 }
  0x53   :  { %572 = vmatpush.msrb.mxu3 %v571_v7  ;;  %v486_v7 = vld [vmem:[#allocation7] sm:$0xff]  ;;  %v1948_v55 = vand.u32 4294901760, %v487_v8 }
  0x54   :  { %433 = vmatpush.msrb.mxu0 %v253_v32  ;;  %466 = vmatpush.msrb.mxu1 %v1619_v48  ;;  %v600_v48 = vsub.f32 %v1839_v27, %v599_v40 }
  0x55   :  { %435 = vmatmul.f32.vlgmr.msrb.gmra.mxu0 %v1667_v18  ;;  %578 = vmatpush.msrb.mxu3 %v577_v35  ;;  %v634_v35 = vsub.f32 %v488_v16, %v1941_v24 }
  0x56   :  { %468 = vmatpush.msrb.mxu1 %v1631_v54  ;;  %662 = vmatpush.msra.mxu0 %v1780_v10  ;;  %v595_v54 = vand.u32 4294901760, %v594_v58  ;;  %v601_v56 = vand.u32 4294901760, %v600_v48  ;;  %v630_v58 = vsub.f32 %v1939_v37, %v629_v38  ;;  %v640_v48 = vsub.f32 %v487_v8, %v1948_v55 }
  0x57   :  { %584 = vmatpush.msrb.mxu3 %v583_v41  ;;  %v1950_v41 = vand.u32 4294901760, %v486_v7 }
  0x58   :  { %470 = vmatpush.msrb.mxu1 %v1643_v60  ;;  %665 = vmatpush.msra.mxu0 %v1783_v29  ;;  %v493_v60 = vld [vmem:[#allocation7 + $0x38] sm:$0xff] }
  0x59   :  { %590 = vmatpush.msrb.mxu3 %v589_v12  ;;  %v635_v12 = vand.u32 4294901760, %v634_v35 }
  0x5a   :  { %472 = vmatpush.msrb.mxu1 %v1655_v6  ;;  %668 = vmatpush.msra.mxu0 %v1786_v34  ;;  %v492_v6 = vld [vmem:[#allocation7 + $0x30] sm:$0xff] }
  0x5b   :  { %596 = vmatpush.msrb.mxu3 %v595_v54  ;;  %v1891_v32 = vand.u32 4294901760, %v492_v6  ;;  %v646_v54 = vsub.f32 %v486_v7, %v1950_v41 }
  0x5c   :  { %474 = vmatpush.msrb.mxu1 %v1669_v25  ;;  %671 = vmatpush.msra.mxu0 %v1789_v39  ;;  %v1889_v25 = vand.u32 4294901760, %v493_v60 }
  0x5d   :  { %439 = vmatmul.f32.gmra.mxu0 %v1695_v49  ;;  %476 = vmatmul.f32.vlgmr.msrb.gmra.mxu1 %v1667_v18  ;;  %v491_v18 = vld [vmem:[#allocation7 + $0x28] sm:$0xff]  ;;  %v1901_v44 = vsub.f32 %v492_v6, %v1891_v32  ;;  %v641_v6 = vand.u32 4294901760, %v640_v48 }
  0x5e   :  { %720 = vmatpush.msra.mxu1 %v1763_v4  ;;  %674 = vmatpush.msra.mxu0 %v1793_v42  ;;  %v1893_v31 = vand.u32 4294901760, %v491_v18  ;;  %v1898_v43 = vsub.f32 %v493_v60, %v1889_v25  ;;  %v636_v60 = vsub.f32 %v634_v35, %v635_v12 }
  0x5f   :  { %602 = vmatpush.msrb.mxu3 %v601_v56  ;;  %523 = vmatpush.msrb.mxu2 %v1889_v25  ;;  %v611_v62 = vand.u32 4294901760, %v1901_v44  ;;  %v631_v56 = vand.u32 4294901760, %v630_v58 }
  0x60   :  { %722 = vmatpush.msra.mxu1 %v1765_v19  ;;  %677 = vmatpush.msra.mxu0 %v1806_v0  ;;  %v1904_v50 = vsub.f32 %v491_v18, %v1893_v31  ;;  %v605_v61 = vand.u32 4294901760, %v1898_v43  ;;  %v647_v18 = vand.u32 4294901760, %v646_v54 }
  0x61   :  { %525 = vmatpush.msrb.mxu2 %v1891_v32  ;;  %v612_v15 = vsub.f32 %v1901_v44, %v611_v62 }
  0x62   :  { %724 = vmatpush.msra.mxu1 %v1767_v20  ;;  %680 = vmatpush.msra.mxu0 %v1828_v2  ;;  %v617_v63 = vand.u32 4294901760, %v1904_v50  ;;  %v606_v3 = vsub.f32 %v1898_v43, %v605_v61 }
  0x63   :  { %527 = vmatpush.msrb.mxu2 %v1893_v31  ;;  %v613_v28 = vand.u32 4294901760, %v612_v15  ;;  %v648_v15 = vsub.f32 %v646_v54, %v647_v18 }
  0x64   :  { %726 = vmatpush.msra.mxu1 %v1770_v9  ;;  %683 = vmatpush.msra.mxu0 %v1839_v27  ;;  %v618_v17 = vsub.f32 %v1904_v50, %v617_v63  ;;  %v607_v22 = vand.u32 4294901760, %v606_v3  ;;  %v642_v3 = vsub.f32 %v640_v48, %v641_v6 }
  0x65   :  { %480 = vmatmul.f32.gmra.mxu1 %v1695_v49  ;;  %v490_v49 = vld [vmem:[#allocation7 + $0x20] sm:$0xff] }
  0x66   :  { %728 = vmatpush.msra.mxu1 %v1772_v23  ;;  %v1895_v33 = vand.u32 4294901760, %v490_v49  ;;  %686 = vmatpush.msra.mxu0 %v1898_v43  ;;  %v619_v59 = vand.u32 4294901760, %v618_v17  ;;  %v643_v17 = vand.u32 4294901760, %v642_v3  ;;  %v893_v43 = vld [vmem:[#allocation8 + $0x68] sm:$0xff] }
  0x67   :  { %608 = vmatpush.msrb.mxu3 %v607_v22 }
  0x68   :  { %730 = vmatpush.msra.mxu1 %v1774_v26  ;;  %v1909_v52 = vsub.f32 %v490_v49, %v1895_v33  ;;  %689 = vmatpush.msra.mxu0 %v1901_v44  ;;  %v637_v49 = vand.u32 4294901760, %v636_v60 }
  0x69   :  { %529 = vmatpush.msrb.mxu2 %v1895_v33  ;;  %614 = vmatpush.msrb.mxu3 %v613_v28 }
  0x6a   :  { %732 = vmatpush.msra.mxu1 %v1801_v53  ;;  %v623_v14 = vand.u32 4294901760, %v1909_v52  ;;  %692 = vmatpush.msra.mxu0 %v1904_v50 }
  0x6b   :  { %531 = vmatpush.msrb.mxu2 %v1933_v45  ;;  %620 = vmatpush.msrb.mxu3 %v619_v59 }
  0x6c   :  { %734 = vmatpush.msra.mxu1 %v1817_v13  ;;  %v624_v5 = vsub.f32 %v1909_v52, %v623_v14  ;;  %695 = vmatpush.msra.mxu0 %v1909_v52 }
  0x6d   :  { %533 = vmatpush.msrb.mxu2 %v1941_v24 }
  0x6e   :  { %736 = vmatpush.msra.mxu1 %v1889_v25  ;;  %v625_v36 = vand.u32 4294901760, %v624_v5  ;;  %698 = vmatpush.msra.mxu0 %v1939_v37  ;;  %v649_v5 = vand.u32 4294901760, %v648_v15 }
  0x6f   :  { %535 = vmatpush.msrb.mxu2 %v1948_v55 }
  0x70   :  { %738 = vmatpush.msra.mxu1 %v1891_v32  ;;  %701 = vmatpush.msra.mxu0 %v634_v35 }
  0x71   :  { %626 = vmatpush.msrb.mxu3 %v625_v36  ;;  %537 = vmatpush.msrb.mxu2 %v1950_v41 }
  0x72   :  { %740 = vmatpush.msra.mxu1 %v1893_v31  ;;  %704 = vmatpush.msra.mxu0 %v640_v48 }
  0x73   :  { %767 = vmatpush.msra.mxu2 %v557_v11  ;;  %632 = vmatpush.msrb.mxu3 %v631_v56 }
  0x74   :  { %742 = vmatpush.msra.mxu1 %v1895_v33  ;;  %707 = vmatpush.msra.mxu0 %v646_v54 }
  0x75   :  { %771 = vmatpush.msra.mxu2 %v563_v47  ;;  %638 = vmatpush.msrb.mxu3 %v637_v49 }
  0x76   :  { %744 = vmatpush.msra.mxu1 %v1933_v45 }
  0x77   :  { %775 = vmatpush.msra.mxu2 %v569_v51  ;;  %644 = vmatpush.msrb.mxu3 %v643_v17 }
  0x78   :  { %746 = vmatpush.msra.mxu1 %v1941_v24 }
  0x79   :  { %779 = vmatpush.msra.mxu2 %v575_v57  ;;  %650 = vmatpush.msrb.mxu3 %v649_v5 }
  0x7a   :  { %748 = vmatpush.msra.mxu1 %v1948_v55 }
  0x7b   :  { %838 = vmatpush.msra.mxu3 %v1763_v4  ;;  %783 = vmatpush.msra.mxu2 %v581_v46 }
  0x7c   :  { %750 = vmatpush.msra.mxu1 %v1950_v41 }
  0x7d   :  { %840 = vmatpush.msra.mxu3 %v1765_v19  ;;  %787 = vmatpush.msra.mxu2 %v587_v1 }
  0x7f   :  { %842 = vmatpush.msra.mxu3 %v1767_v20  ;;  %791 = vmatpush.msra.mxu2 %v593_v30  ;;  %v1334_v20 = vld [vmem:[%s2217_s2] ss:$0 sm:$0xff] }
  0x81   :  { %844 = vmatpush.msra.mxu3 %v1770_v9  ;;  %795 = vmatpush.msra.mxu2 %v599_v40 }
  0x83   :  { %846 = vmatpush.msra.mxu3 %v1772_v23  ;;  %799 = vmatpush.msra.mxu2 %v605_v61  ;;  %v2013_v61 = vand.u32 4294901760, %v893_v43 }
  0x85   :  { %848 = vmatpush.msra.mxu3 %v1774_v26  ;;  %803 = vmatpush.msra.mxu2 %v611_v62  ;;  %v892_v62 = vld [vmem:[#allocation8 + $0x60] sm:$0xff]  ;;  %v962_v59 = vsub.f32 %v893_v43, %v2013_v61 }
  0x86   :  { %v2015_v22 = vand.u32 4294901760, %v892_v62 }
  0x87   :  { %850 = vmatpush.msra.mxu3 %v1801_v53  ;;  %807 = vmatpush.msra.mxu2 %v617_v63  ;;  %v891_v63 = vld [vmem:[#allocation8 + $0x58] sm:$0xff]  ;;  %v2030_v35 = vand.u32 4294901760, %v962_v59 }
  0x88   :  { %v2017_v28 = vand.u32 4294901760, %v891_v63  ;;  %v968_v36 = vsub.f32 %v892_v62, %v2015_v22 }
  0x89   :  { %852 = vmatpush.msra.mxu3 %v1817_v13  ;;  %811 = vmatpush.msra.mxu2 %v623_v14  ;;  %v964_v54 = vsub.f32 %v962_v59, %v2030_v35 }
  0x8a   :  { %v974_v8 = vsub.f32 %v891_v63, %v2017_v28  ;;  %v2034_v58 = vand.u32 4294901760, %v968_v36 }
  0x8b   :  { %854 = vmatpush.msra.mxu3 %v1889_v25  ;;  %815 = vmatpush.msra.mxu2 %v629_v38  ;;  %v965_v15 = vand.u32 4294901760, %v964_v54 }
  0x8c   :  { %v2039_v56 = vand.u32 4294901760, %v974_v8  ;;  %v970_v49 = vsub.f32 %v968_v36, %v2034_v58 }
  0x8d   :  { %856 = vmatpush.msra.mxu3 %v1891_v32  ;;  %819 = vmatpush.msra.mxu2 %v635_v12 }
  0x8e   :  { %v976_v17 = vsub.f32 %v974_v8, %v2039_v56 }
  0x8f   :  { %858 = vmatpush.msra.mxu3 %v1893_v31  ;;  %823 = vmatpush.msra.mxu2 %v641_v6  ;;  %v895_v31 = vld [vmem:[#allocation8 + $0x78] sm:$0xff] }
  0x90   :  { %v2009_v50 = vand.u32 4294901760, %v895_v31 }
  0x91   :  { %860 = vmatpush.msra.mxu3 %v1895_v33  ;;  %827 = vmatpush.msra.mxu2 %v647_v18  ;;  %v894_v33 = vld [vmem:[#allocation8 + $0x70] sm:$0xff] }
  0x92   :  { %v2011_v52 = vand.u32 4294901760, %v894_v33  ;;  %901 = vmatpush.msrb.mxu0 %v2009_v50 }
  0x93   :  { %862 = vmatpush.msra.mxu3 %v1933_v45  ;;  %v950_v45 = vsub.f32 %v895_v31, %v2009_v50 }
  0x94   :  { %v956_v16 = vsub.f32 %v894_v33, %v2011_v52  ;;  %903 = vmatpush.msrb.mxu0 %v2011_v52 }
  0x95   :  { %864 = vmatpush.msra.mxu3 %v1941_v24  ;;  %v2026_v7 = vand.u32 4294901760, %v950_v45 }
  0x96   :  { %v2028_v38 = vand.u32 4294901760, %v956_v16  ;;  %905 = vmatpush.msrb.mxu0 %v2013_v61 }
  0x97   :  { %866 = vmatpush.msra.mxu3 %v1948_v55  ;;  %v952_v12 = vsub.f32 %v950_v45, %v2026_v7 }
  0x98   :  { %v958_v48 = vsub.f32 %v956_v16, %v2028_v38  ;;  %907 = vmatpush.msrb.mxu0 %v2015_v22 }
  0x99   :  { %868 = vmatpush.msra.mxu3 %v1950_v41  ;;  %v953_v6 = vand.u32 4294901760, %v952_v12 }
  0x9a   :  { %v959_v18 = vand.u32 4294901760, %v958_v48  ;;  %909 = vmatpush.msrb.mxu0 %v2017_v28 }
  0x9b   :  { %954 = vmatpush.msrb.mxu1 %v953_v6  ;;  %v881_v6 = vld [vmem:[#allocation8 + $0x8] sm:$0xff] }
  0x9d   :  { %960 = vmatpush.msrb.mxu1 %v959_v18 }
  0x9f   :  { %966 = vmatpush.msrb.mxu1 %v965_v15 }
  0xb2   :  { %v150_v4 = vpop.f32.mrf.mxu0 }
  0xb3   :  { %v151_v23 = vadd.f32 %v1334_v20, %v150_v4  ;;  %v971_v4 = vand.u32 4294901760, %v970_v49 }
  0xb5   :  { %972 = vmatpush.msrb.mxu1 %v971_v4 }
  0xba   :  { %v259_v19 = vpop.f32.mrf.mxu1  ;;  %v158_v9 = vpop.f32.mrf.mxu0 }
  0xbb   :  { %v260_v10 = vadd.f32 %v259_v19, %v151_v23  ;;  %v159_v39 = vadd.f32 %v1334_v20, %v158_v9  ;;  %v977_v20 = vand.u32 4294901760, %v976_v17  ;;  %v890_v9 = vld [vmem:[#allocation8 + $0x50] sm:$0xff]  ;;  %v2117_v17 = vand.u32 4294901760, %v881_v6 }
  0xbc   :  { %v317_v26 = vpop.f32.mrf.mxu2  ;;  %v361_v34 = vpop.f32.mrf.mxu3  ;;  %v2051_v23 = vand.u32 4294901760, %v890_v9 }
  0xbd   :  { %v318_v42 = vadd.f32 %v317_v26, %v260_v10  ;;  %978 = vmatpush.msrb.mxu1 %v977_v20  ;;  %v889_v26 = vld [vmem:[#allocation8 + $0x48] sm:$0xff] }
  0xbe   :  { %v980_v10 = vsub.f32 %v890_v9, %v2051_v23  ;;  %911 = vmatpush.msrb.mxu0 %v2051_v23 }
  0xbf   :  { %v362_v47 = vadd.f32 %v361_v34, %v318_v42  ;;  %v888_v34 = vld [vmem:[#allocation8 + $0x40] sm:$0xff] }
  0xc2   :  { %v263_v29 = vpop.f32.mrf.mxu1 }
  0xc3   :  { %v264_v51 = vadd.f32 %v263_v29, %v159_v39  ;;  %v2054_v29 = vand.u32 4294901760, %v889_v26  ;;  %v2058_v39 = vand.u32 4294901760, %v980_v10 }
  0xc4   :  { %v322_v53 = vpop.f32.mrf.mxu2  ;;  %v367_v2 = vpop.f32.mrf.mxu3 }
  0xc5   :  { %v323_v13 = vadd.f32 %v322_v53, %v264_v51  ;;  %v986_v42 = vsub.f32 %v889_v26, %v2054_v29  ;;  %913 = vmatpush.msrb.mxu0 %v2054_v29  ;;  %v982_v51 = vsub.f32 %v980_v10, %v2058_v39  ;;  %v1034_v26 = vsub.f32 %v881_v6, %v2117_v17 }
  0xc7   :  { %v368_v30 = vadd.f32 %v367_v2, %v323_v13  ;;  %v2066_v53 = vand.u32 4294901760, %v986_v42  ;;  %v886_v13 = vld [vmem:[#allocation8 + $0x30] sm:$0xff] }
  0xc9   :  { %v988_v2 = vsub.f32 %v986_v42, %v2066_v53 }
  0xd2   :  { %v436_v11 = vpop.f32.mrf.mxu0 }
  0xd3   :  { %v437_v57 = vadd.f32 %v436_v11, %v362_v47  ;;  %v2061_v11 = vand.u32 4294901760, %v888_v34  ;;  %v887_v47 = vld [vmem:[#allocation8 + $0x38] sm:$0xff] }
  0xd5   :  { %915 = vmatpush.msrb.mxu0 %v2061_v11 }
  0xda   :  { %v477_v0 = vpop.f32.mrf.mxu1  ;;  %v440_v27 = vpop.f32.mrf.mxu0 }
  0xdb   :  { %v478_v46 = vadd.f32 %v477_v0, %v437_v57  ;;  %v441_v25 = vadd.f32 %v440_v27, %v368_v30  ;;  %v992_v57 = vsub.f32 %v888_v34, %v2061_v11  ;;  %v2069_v0 = vand.u32 4294901760, %v887_v47 }
  0xdc   :  { %v2078_v30 = vand.u32 4294901760, %v886_v13 }
  0xdd   :  { %v484_v1 = vmax.f32 %v478_v46, 0.0  ;;  %v983_v46 = vand.u32 4294901760, %v982_v51  ;;  %v998_v27 = vsub.f32 %v887_v47, %v2069_v0  ;;  %917 = vmatpush.msrb.mxu0 %v2069_v0  ;;  %v2131_v47 = vand.u32 4294901760, %v1034_v26 }
  0xde   :  { %v1004_v43 = vsub.f32 %v886_v13, %v2078_v30 }
  0xdf   :  { %v2005_v40 = vand.u32 4294901760, %v484_v1  ;;  %984 = vmatpush.msrb.mxu1 %v983_v46  ;;  %v2082_v31 = vand.u32 4294901760, %v998_v27  ;;  %919 = vmatpush.msrb.mxu0 %v2078_v30  ;;  %v1036_v13 = vsub.f32 %v1034_v26, %v2131_v47 }
  0xe1   :  { %v539_v32 = vsub.f32 %v484_v1, %v2005_v40  ;;  %652 = vmatmul.f32.vlgmr.msrb.gmra.mxu3 %v2005_v40  ;;  %v2074_v1 = vand.u32 4294901760, %v992_v57  ;;  %v1000_v63 = vsub.f32 %v998_v27, %v2082_v31 }
  0xe2   :  { %v481_v44 = vpop.f32.mrf.mxu1  ;;  %1114 = vmatpush.msrb.mxu3 %v2009_v50 }
  0xe3   :  { %v482_v14 = vadd.f32 %v481_v44, %v441_v25  ;;  %710 = vmatmul.f32.vlgmr.msra.gmra.mxu0 %v539_v32  ;;  %v540_v21 = vand.u32 4294901760, %v539_v32  ;;  %v989_v25 = vand.u32 4294901760, %v988_v2  ;;  %v884_v44 = vld [vmem:[#allocation8 + $0x20] sm:$0xff]  ;;  %v1037_v2 = vand.u32 4294901760, %v1036_v13 }
  0xe4   :  { %1116 = vmatpush.msrb.mxu3 %v2011_v52 }
  0xe5   :  { %v485_v37 = vmax.f32 %v482_v14, 0.0  ;;  %754 = vmatmul.f32.vlgmr.msra.gmra.mxu1 %v540_v21  ;;  %v541_v24 = vsub.f32 %v539_v32, %v540_v21  ;;  %v994_v32 = vsub.f32 %v992_v57, %v2074_v1  ;;  %v2091_v21 = vand.u32 4294901760, %v884_v44 }
  0xe6   :  { %1118 = vmatpush.msrb.mxu3 %v2013_v61  ;;  %990 = vmatpush.msrb.mxu1 %v989_v25 }
  0xe7   :  { %v546_v55 = vand.u32 4294901760, %v485_v37  ;;  %v542_v41 = vand.u32 4294901760, %v541_v24  ;;  %v995_v62 = vand.u32 4294901760, %v994_v32  ;;  %v1016_v24 = vsub.f32 %v884_v44, %v2091_v21 }
  0xe8   :  { %1120 = vmatpush.msrb.mxu3 %v2015_v22 }
  0xe9   :  { %v547_v60 = vsub.f32 %v485_v37, %v546_v55  ;;  %543 = vmatmul.f32.vlgmr.msrb.gmra.mxu2 %v542_v41  ;;  %656 = vmatmul.f32.gmra.mxu3 %v546_v55  ;;  %v2105_v12 = vand.u32 4294901760, %v1016_v24 }
  0xea   :  { %1056 = vmatpush.msrb.mxu2 %v950_v45  ;;  %1122 = vmatpush.msrb.mxu3 %v2017_v28  ;;  %v2093_v45 = vand.u32 4294901760, %v1004_v43 }
  0xeb   :  { %715 = vmatmul.f32.gmra.mxu0 %v547_v60  ;;  %v548_v3 = vand.u32 4294901760, %v547_v60  ;;  %996 = vmatpush.msrb.mxu1 %v995_v62  ;;  %v1018_v49 = vsub.f32 %v1016_v24, %v2105_v12 }
  0xec   :  { %1059 = vmatpush.msrb.mxu2 %v956_v16  ;;  %1124 = vmatpush.msrb.mxu3 %v2051_v23  ;;  %v883_v16 = vld [vmem:[#allocation8 + $0x18] sm:$0xff] }
  0xed   :  { %760 = vmatmul.f32.gmra.mxu1 %v548_v3  ;;  %v549_v5 = vsub.f32 %v547_v60, %v548_v3  ;;  %v1019_v4 = vand.u32 4294901760, %v1018_v49 }
  0xee   :  { %1062 = vmatpush.msrb.mxu2 %v962_v59  ;;  %1126 = vmatpush.msrb.mxu3 %v2054_v29  ;;  %v1001_v59 = vand.u32 4294901760, %v1000_v63 }
  0xef   :  { %v550_v19 = vand.u32 4294901760, %v549_v5  ;;  %v880_v5 = vld [vmem:[#allocation8] sm:$0xff] }
  0xf0   :  { %1065 = vmatpush.msrb.mxu2 %v968_v36  ;;  %1128 = vmatpush.msrb.mxu3 %v2061_v11  ;;  %v2099_v36 = vand.u32 4294901760, %v883_v16  ;;  %v2122_v9 = vand.u32 4294901760, %v880_v5 }
  0xf1   :  { %551 = vmatmul.f32.gmra.mxu2 %v550_v19  ;;  %870 = vmatmul.f32.vlgmr.msra.gmra.mxu3 %v2005_v40 }
  0xf2   :  { %1068 = vmatpush.msrb.mxu2 %v974_v8  ;;  %1130 = vmatpush.msrb.mxu3 %v2069_v0  ;;  %v1006_v8 = vsub.f32 %v1004_v43, %v2093_v45  ;;  %v1022_v48 = vsub.f32 %v883_v16, %v2099_v36 }
  0xf3   :  { %1002 = vmatpush.msrb.mxu1 %v1001_v59 }
  0xf4   :  { %1071 = vmatpush.msrb.mxu2 %v980_v10  ;;  %1132 = vmatpush.msrb.mxu3 %v2078_v30  ;;  %v1007_v60 = vand.u32 4294901760, %v1006_v8  ;;  %v2113_v3 = vand.u32 4294901760, %v1022_v48 }
  0xf6   :  { %1074 = vmatpush.msrb.mxu2 %v986_v42  ;;  %1008 = vmatpush.msrb.mxu1 %v1007_v60  ;;  %v1024_v19 = vsub.f32 %v1022_v48, %v2113_v3  ;;  %v1040_v42 = vsub.f32 %v880_v5, %v2122_v9 }
  0xf8   :  { %1077 = vmatpush.msrb.mxu2 %v992_v57  ;;  %v1025_v10 = vand.u32 4294901760, %v1024_v19  ;;  %v2133_v57 = vand.u32 4294901760, %v1040_v42 }
  0xf9   :  { %829 = vmatmul.f32.vlgmr.msra.gmra.mxu2 %v2005_v40  ;;  %874 = vmatmul.f32.gmra.mxu3 %v546_v55  ;;  %v885_v40 = vld [vmem:[#allocation8 + $0x28] sm:$0xff] }
  0xfa   :  { %1080 = vmatpush.msrb.mxu2 %v998_v27  ;;  %v2084_v33 = vand.u32 4294901760, %v885_v40  ;;  %v1042_v46 = vsub.f32 %v1040_v42, %v2133_v57 }
  0xfc   :  { %v1010_v14 = vsub.f32 %v885_v40, %v2084_v33  ;;  %1083 = vmatpush.msrb.mxu2 %v1004_v43  ;;  %1134 = vmatpush.msrb.mxu3 %v2084_v33  ;;  %v1043_v27 = vand.u32 4294901760, %v1042_v46 }
  0xfd   :  { %921 = vmatpush.msrb.mxu0 %v2084_v33 }
  0xfe   :  { %v2096_v37 = vand.u32 4294901760, %v1010_v14  ;;  %1086 = vmatpush.msrb.mxu2 %v1010_v14  ;;  %1136 = vmatpush.msrb.mxu3 %v2091_v21 }
  0xff   :  { %923 = vmatpush.msrb.mxu0 %v2091_v21 }
 0x100   :  { %v1012_v41 = vsub.f32 %v1010_v14, %v2096_v37  ;;  %1089 = vmatpush.msrb.mxu2 %v1016_v24  ;;  %1138 = vmatpush.msrb.mxu3 %v2099_v36 }
 0x101   :  { %833 = vmatmul.f32.gmra.mxu2 %v546_v55  ;;  %v882_v55 = vld [vmem:[#allocation8 + $0x10] sm:$0xff]  ;;  %925 = vmatpush.msrb.mxu0 %v2099_v36 }
 0x102   :  { %v2108_v54 = vand.u32 4294901760, %v882_v55  ;;  %v1013_v18 = vand.u32 4294901760, %v1012_v41  ;;  %1092 = vmatpush.msrb.mxu2 %v1022_v48 }
 0x104   :  { %v1028_v15 = vsub.f32 %v882_v55, %v2108_v54  ;;  %1140 = vmatpush.msrb.mxu3 %v2108_v54  ;;  %927 = vmatpush.msrb.mxu0 %v2108_v54 }
 0x105   :  { %1014 = vmatpush.msrb.mxu1 %v1013_v18 }
 0x106   :  { %v2120_v20 = vand.u32 4294901760, %v1028_v15  ;;  %1095 = vmatpush.msrb.mxu2 %v1028_v15  ;;  %1142 = vmatpush.msrb.mxu3 %v2117_v17 }
 0x107   :  { %929 = vmatpush.msrb.mxu0 %v2117_v17  ;;  %1020 = vmatpush.msrb.mxu1 %v1019_v4 }
 0x108   :  { %v1030_v34 = vsub.f32 %v1028_v15, %v2120_v20  ;;  %1098 = vmatpush.msrb.mxu2 %v1034_v26  ;;  %1144 = vmatpush.msrb.mxu3 %v2122_v9 }
 0x109   :  { %931 = vmatpush.msrb.mxu0 %v2122_v9  ;;  %1026 = vmatpush.msrb.mxu1 %v1025_v10 }
 0x10a   :  { %v1031_v51 = vand.u32 4294901760, %v1030_v34  ;;  %1101 = vmatpush.msrb.mxu2 %v1040_v42  ;;  %1311 = vmatpush.msra.mxu3 %v2009_v50 }
 0x10b   :  { %1161 = vmatpush.msra.mxu0 %v2026_v7 }
 0x10c   :  { %1295 = vmatpush.msra.mxu2 %v2026_v7  ;;  %1032 = vmatpush.msrb.mxu1 %v1031_v51 }
 0x10d   :  { %1312 = vmatpush.msra.mxu3 %v2011_v52  ;;  %1165 = vmatpush.msra.mxu0 %v2028_v38 }
 0x10e   :  { %1296 = vmatpush.msra.mxu2 %v2028_v38  ;;  %1038 = vmatpush.msrb.mxu1 %v1037_v2 }
 0x10f   :  { %1313 = vmatpush.msra.mxu3 %v2013_v61  ;;  %1169 = vmatpush.msra.mxu0 %v2030_v35 }
 0x110   :  { %1297 = vmatpush.msra.mxu2 %v2030_v35  ;;  %1044 = vmatpush.msrb.mxu1 %v1043_v27 }
 0x111   :  { %1314 = vmatpush.msra.mxu3 %v2015_v22  ;;  %1173 = vmatpush.msra.mxu0 %v2034_v58 }
 0x112   :  { %1232 = vmatpush.msra.mxu1 %v2009_v50  ;;  %1298 = vmatpush.msra.mxu2 %v2034_v58 }
 0x113   :  { %1315 = vmatpush.msra.mxu3 %v2017_v28  ;;  %1177 = vmatpush.msra.mxu0 %v2039_v56 }
 0x114   :  { %1234 = vmatpush.msra.mxu1 %v2011_v52  ;;  %1299 = vmatpush.msra.mxu2 %v2039_v56  ;;  %v1335_v52 = vld [vmem:[%s2219_s4] ss:$0 sm:$0xff] }
 0x115   :  { %1316 = vmatpush.msra.mxu3 %v2051_v23  ;;  %1181 = vmatpush.msra.mxu0 %v2058_v39 }
 0x116   :  { %1236 = vmatpush.msra.mxu1 %v2013_v61  ;;  %1300 = vmatpush.msra.mxu2 %v2058_v39 }
 0x117   :  { %1317 = vmatpush.msra.mxu3 %v2054_v29  ;;  %1185 = vmatpush.msra.mxu0 %v2066_v53 }
 0x118   :  { %1238 = vmatpush.msra.mxu1 %v2015_v22  ;;  %1301 = vmatpush.msra.mxu2 %v2066_v53 }
 0x119   :  { %1318 = vmatpush.msra.mxu3 %v2061_v11  ;;  %1189 = vmatpush.msra.mxu0 %v2074_v1 }
 0x11a   :  { %1240 = vmatpush.msra.mxu1 %v2017_v28  ;;  %1302 = vmatpush.msra.mxu2 %v2074_v1 }
 0x11b   :  { %1319 = vmatpush.msra.mxu3 %v2069_v0  ;;  %1193 = vmatpush.msra.mxu0 %v2082_v31 }
 0x11c   :  { %1242 = vmatpush.msra.mxu1 %v2051_v23  ;;  %1303 = vmatpush.msra.mxu2 %v2082_v31 }
 0x11d   :  { %1320 = vmatpush.msra.mxu3 %v2078_v30  ;;  %1197 = vmatpush.msra.mxu0 %v2093_v45 }
 0x11e   :  { %1244 = vmatpush.msra.mxu1 %v2054_v29  ;;  %1304 = vmatpush.msra.mxu2 %v2093_v45 }
 0x11f   :  { %1321 = vmatpush.msra.mxu3 %v2084_v33  ;;  %1201 = vmatpush.msra.mxu0 %v2096_v37 }
 0x120   :  { %1246 = vmatpush.msra.mxu1 %v2061_v11  ;;  %1305 = vmatpush.msra.mxu2 %v2096_v37 }
 0x121   :  { %1322 = vmatpush.msra.mxu3 %v2091_v21  ;;  %1205 = vmatpush.msra.mxu0 %v2105_v12 }
 0x122   :  { %1248 = vmatpush.msra.mxu1 %v2069_v0  ;;  %1306 = vmatpush.msra.mxu2 %v2105_v12  ;;  %v1336_v12 = vld [vmem:[%s2221_s6] ss:$0 sm:$0xff]  ;;  %s1278_s6 = sshll.u32 %s1471_s23, 4  ;;  %s1279_s6 = int_to_ptr.vmem [resolvable:$true] %s1278_s6 }
 0x123   :  { %1323 = vmatpush.msra.mxu3 %v2099_v36  ;;  %1209 = vmatpush.msra.mxu0 %v2113_v3 }
 0x124   :  { %1250 = vmatpush.msra.mxu1 %v2078_v30  ;;  %1307 = vmatpush.msra.mxu2 %v2113_v3 }
 0x125   :  { %1324 = vmatpush.msra.mxu3 %v2108_v54  ;;  %1213 = vmatpush.msra.mxu0 %v2120_v20 }
 0x126   :  { %1252 = vmatpush.msra.mxu1 %v2084_v33  ;;  %1308 = vmatpush.msra.mxu2 %v2120_v20 }
 0x127   :  { %1325 = vmatpush.msra.mxu3 %v2117_v17  ;;  %1217 = vmatpush.msra.mxu0 %v2131_v47 }
 0x128   :  { %1254 = vmatpush.msra.mxu1 %v2091_v21  ;;  %1309 = vmatpush.msra.mxu2 %v2131_v47 }
 0x129   :  { %1326 = vmatpush.msra.mxu3 %v2122_v9  ;;  %1221 = vmatpush.msra.mxu0 %v2133_v57 }
 0x12a   :  { %1256 = vmatpush.msra.mxu1 %v2099_v36  ;;  %1310 = vmatpush.msra.mxu2 %v2133_v57 }
 0x12c   :  { %1258 = vmatpush.msra.mxu1 %v2108_v54 }
 0x12e   :  { %1260 = vmatpush.msra.mxu1 %v2117_v17 }
 0x130   :  { %1262 = vmatpush.msra.mxu1 %v2122_v9 }
 0x160   :  { %v711_v38 = vpop.f32.mrf.mxu0 }
 0x162   :  { %v755_v23 = vpop.f32.mrf.mxu1 }
 0x164   :  { %v653_v50 = vpop.f32.mrf.mxu3 }
 0x168   :  { %v716_v1 = vpop.f32.mrf.mxu0 }
 0x16a   :  { %v761_v32 = vpop.f32.mrf.mxu1 }
 0x16c   :  { %v544_v61 = vpop.f32.mrf.mxu2  ;;  %v657_v28 = vpop.f32.mrf.mxu3 }
 0x16d   :  { %v545_v22 = vadd.f32 %v1335_v52, %v544_v61 }
 0x16f   :  { %v654_v7 = vadd.f32 %v653_v50, %v545_v22 }
 0x171   :  { %v712_v56 = vadd.f32 %v711_v38, %v654_v7 }
 0x173   :  { %v756_v39 = vadd.f32 %v755_v23, %v712_v56 }
 0x174   :  { %v552_v35 = vpop.f32.mrf.mxu2  ;;  %v871_v11 = vpop.f32.mrf.mxu3 }
 0x175   :  { %v553_v58 = vadd.f32 %v1335_v52, %v552_v35 }
 0x177   :  { %v658_v29 = vadd.f32 %v657_v28, %v553_v58 }
 0x179   :  { %v717_v40 = vadd.f32 %v716_v1, %v658_v29 }
 0x17b   :  { %v762_v33 = vadd.f32 %v761_v32, %v717_v40 }
 0x17c   :  { %v830_v53 = vpop.f32.mrf.mxu2  ;;  %v875_v63 = vpop.f32.mrf.mxu3 }
 0x17d   :  { %v831_v0 = vadd.f32 %v830_v53, %v756_v39 }
 0x17f   :  { %v872_v30 = vadd.f32 %v871_v11, %v831_v0 }
 0x181   :  { %v878_v25 = vmax.f32 %v872_v30, 0.0 }
 0x183   :  { %v932_v31 = vand.u32 4294901760, %v878_v25 }
 0x184   :  { %v834_v43 = vpop.f32.mrf.mxu2 }
 0x185   :  { %v933_v44 = vsub.f32 %v878_v25, %v932_v31  ;;  %v835_v62 = vadd.f32 %v834_v43, %v762_v33  ;;  %1046 = vmatmul.f32.vlgmr.msrb.gmra.mxu1 %v932_v31 }
 0x187   :  { %v876_v14 = vadd.f32 %v875_v63, %v835_v62  ;;  %1104 = vmatmul.f32.vlgmr.msrb.gmra.mxu2 %v933_v44  ;;  %v934_v21 = vand.u32 4294901760, %v933_v44 }
 0x189   :  { %v879_v45 = vmax.f32 %v876_v14, 0.0  ;;  %1148 = vmatmul.f32.vlgmr.msrb.gmra.mxu3 %v934_v21  ;;  %v935_v16 = vsub.f32 %v933_v44, %v934_v21 }
 0x18b   :  { %v940_v59 = vand.u32 4294901760, %v879_v45  ;;  %v936_v37 = vand.u32 4294901760, %v935_v16 }
 0x18d   :  { %937 = vmatmul.f32.vlgmr.msrb.gmra.mxu0 %v936_v37  ;;  %1050 = vmatmul.f32.gmra.mxu1 %v940_v59  ;;  %v941_v24 = vsub.f32 %v879_v45, %v940_v59 }
 0x18f   :  { %1109 = vmatmul.f32.gmra.mxu2 %v941_v24  ;;  %v942_v36 = vand.u32 4294901760, %v941_v24 }
 0x191   :  { %1154 = vmatmul.f32.gmra.mxu3 %v942_v36  ;;  %v943_v8 = vsub.f32 %v941_v24, %v942_v36 }
 0x193   :  { %v944_v55 = vand.u32 4294901760, %v943_v8 }
 0x195   :  { %945 = vmatmul.f32.gmra.mxu0 %v944_v55  ;;  %1264 = vmatmul.f32.vlgmr.msra.gmra.mxu1 %v932_v31 }
 0x197   :  { %1227 = vmatmul.f32.vlgmr.msra.gmra.mxu2 %v940_v59 }
 0x199   :  { %1268 = vmatmul.f32.vlgmr.msra.gmra.mxu3 %v940_v59 }
 0x19d   :  { %1223 = vmatmul.f32.vlgmr.msra.gmra.mxu0 %v932_v31 }
 0x202   :  { %v1047_v41 = vpop.f32.mrf.mxu1 }
 0x20a   :  { %v938_v48 = vpop.f32.mrf.mxu0  ;;  %v1105_v54 = vpop.f32.mrf.mxu2 }
 0x20b   :  { %v939_v6 = vadd.f32 %v1336_v12, %v938_v48  ;;  %v1051_v49 = vpop.f32.mrf.mxu1 }
 0x20c   :  { %v1149_v60 = vpop.f32.mrf.mxu3 }
 0x20d   :  { %v1048_v18 = vadd.f32 %v1047_v41, %v939_v6 }
 0x20f   :  { %v1106_v4 = vadd.f32 %v1105_v54, %v1048_v18 }
 0x211   :  { %v1150_v9 = vadd.f32 %v1149_v60, %v1106_v4 }
 0x212   :  { %v946_v3 = vpop.f32.mrf.mxu0  ;;  %v1110_v17 = vpop.f32.mrf.mxu2 }
 0x213   :  { %v947_v15 = vadd.f32 %v1336_v12, %v946_v3  ;;  %v1265_v47 = vpop.f32.mrf.mxu1 }
 0x214   :  { %v1155_v5 = vpop.f32.mrf.mxu3 }
 0x215   :  { %v1052_v19 = vadd.f32 %v1051_v49, %v947_v15 }
 0x217   :  { %v1111_v20 = vadd.f32 %v1110_v17, %v1052_v19 }
 0x219   :  { %v1156_v26 = vadd.f32 %v1155_v5, %v1111_v20 }
 0x21a   :  { %v1224_v10 = vpop.f32.mrf.mxu0  ;;  %v1228_v42 = vpop.f32.mrf.mxu2 }
 0x21b   :  { %v1225_v34 = vadd.f32 %v1224_v10, %v1150_v9  ;;  %v1229_v51 = vadd.f32 %v1228_v42, %v1156_v26 }
 0x21c   :  { %v1269_v57 = vpop.f32.mrf.mxu3 }
 0x21d   :  { %v1266_v13 = vadd.f32 %v1265_v47, %v1225_v34  ;;  %v1270_v46 = vadd.f32 %v1269_v57, %v1229_v51 }
 0x21f   :  { %1272 = vst [vmem:[#allocation10] sm:$0xff] %v1266_v13 }
 0x220   :  { %1273 = vst [vmem:[#allocation10 + $0x8] sm:$0xff] %v1270_v46 }
 0x221   :  { %1286 = dma.vmem_to_hbm [thread:$0]  %s1279_s6, 256, %s1281_s26, [#allocation4], %s1466_s9, %s1466_s9, %s1467_s10  }
 0x222   :  { %1463 = dma.done.wait [#allocation4], 256  }
 0x223   :  { %1464 = vsyncadd [#allocation4], 4294967040 }
 0x224   :  { %1291 = vsyncpa [#allocation3], 1 }
 0x225   :  { %1292 = vsyncpa [#allocation6], 1 }
 0x226   :  { %1293 = vsyncpa [#allocation9], 1 }
 0x227   :  { %1294 = vsyncpa [#allocation4], 1 }

</bundles_post_ra>
